<compile_context>
chip_gen: v7x
topology: tpu7x:2x2x1
jax: 0.10.0
libtpu: 0.0.40
codegen_flags: <defaults>
</compile_context>

<pallas_src>
import functools

import jax
import jax.numpy as jnp
import numpy as np
from jax import lax
from jax.experimental import pallas as pl
from jax.experimental.pallas import tpu as pltpu

EPS = 1e-5
SLOPE = 0.01  # PyTorch LeakyReLU default negative_slope


def _round_up(v, m):
    return -(-v // m) * m


def _basic_block_kernel(x_ref, w1d_ref, w2_ref, gnp_ref, out_ref, *,
                        bt, l_valid, c_out, in_kernel_taps):
    """Processes `bt` samples per grid step.

    x_ref  : (bt, C_in_p, Lp)      if in_kernel_taps (stride == 1), else (bt, 3*C_in_p, Lp)
    w1d_ref: (2*C_out_p, 3*C_in_p) conv1 weight stacked on top of the (center-tap) downsample
    w2_ref : (C_out_p, 3*C_out_p)  folded conv2 weight
    gnp_ref: (6, C_out_p, 1)       [g1, b1, g2, b2, g3, b3] (float32)
    out_ref: (bt, C_out_p, Lp)     float32
    """
    Lp = x_ref.shape[-1]
    inv_l = 1.0 / float(l_valid)

    lane = jax.lax.broadcasted_iota(jnp.int32, (1, Lp), 1)
    m_valid = lane < l_valid            # real output columns
    m_left = lane >= 1                  # "previous column" tap is in-range
    m_right = lane < (l_valid - 1)      # "next column" tap is in-range

    # Loaded once per grid step (the fori_loop body is traced once, so these are not re-splatted
    # per sample; the lane broadcast of the (C,1) vectors fuses into the elementwise ops).
    g1, b1 = gnp_ref[0], gnp_ref[1]
    g2, b2 = gnp_ref[2], gnp_ref[3]
    g3, b3 = gnp_ref[4], gnp_ref[5]
    w1d = w1d_ref[...]
    w2 = w2_ref[...]

    def gnorm(t, g, b_):
        # GroupNorm(num_groups == channels): per-(sample, channel) stats over the l_valid real
        # columns.  `t` is exactly zero on padded lanes (enforced by the m_valid masks below),
        # so the first-pass sum is exact; the second pass re-masks (t - mu).
        mu = jnp.sum(t, axis=-1, keepdims=True) * inv_l
        diff = jnp.where(m_valid, t - mu, 0.0)
        var = jnp.sum(diff * diff, axis=-1, keepdims=True) * inv_l
        return diff * jax.lax.rsqrt(var + EPS) * g + b_

    def lrelu(t):
        return jnp.where(t >= 0, t, SLOPE * t)

    def body(b, carry):
        if in_kernel_taps:
            # stride == 1: build the conv1 taps from x with XLU rolls (no im2col slab in HBM).
            xc = x_ref[b]                                                    # (C_in_p, Lp)
            xl = jnp.where(m_left, pltpu.roll(xc, shift=1, axis=1), jnp.zeros_like(xc))
            xr = jnp.where(m_right, pltpu.roll(xc, shift=Lp - 1, axis=1), jnp.zeros_like(xc))
            xs3 = jnp.concatenate([xl, xc, xr], axis=0)                      # (3*C_in_p, Lp)
        else:
            xs3 = x_ref[b]                                                   # (3*C_in_p, Lp)

        # ---- conv1 (k=3) + 1x1 downsample in ONE MXU matmul ----
        hd = jnp.dot(w1d, xs3, preferred_element_type=jnp.float32)           # (2*c_out, Lp)
        hd = jnp.where(m_valid, hd, 0.0)     # keep padded lanes exactly zero for GN stats
        h = hd[:c_out]                       # conv1 pre-GN   (free sublane slice, c_out % 8 == 0)
        d = hd[c_out:]                       # downsample pre-GN

        # ---- gn1 + LeakyReLU; re-zero padded lanes so conv2 taps / gn2 stats stay clean ----
        h = jnp.where(m_valid, lrelu(gnorm(h, g1, b1)), 0.0)

        # ---- conv2 (k=3, stride 1, pad 1): taps via XLU rolls + boundary masks ----
        hl = jnp.where(m_left, pltpu.roll(h, shift=1, axis=1), 0.0)          # h[j-1] at column j
        hr = jnp.where(m_right, pltpu.roll(h, shift=Lp - 1, axis=1), 0.0)    # h[j+1] at column j
        h3 = jnp.concatenate([hl, h, hr], axis=0).astype(w2.dtype)           # (3*c_out, Lp)
        o = jnp.dot(w2, h3, preferred_element_type=jnp.float32)
        o = jnp.where(m_valid, o, 0.0)

        # ---- gn2, gn3, residual add, final LeakyReLU ----
        out_ref[b] = lrelu(gnorm(o, g2, b2) + gnorm(d, g3, b3))
        return carry

    lax.fori_loop(0, bt, body, 0, unroll=bt <= 8)


def _vmem_budget():
    try:
        vmem_cap = int(pltpu.get_tpu_info().vmem_capacity_bytes)
    except Exception:
        vmem_cap = 64 << 20          # conservative fallback (v7x-sized)
    vmem_limit = min((vmem_cap * 3) // 4, 100 << 20)
    return vmem_limit


def _pick_bt(n, in_bytes_per_sample, out_bytes_per_sample, vmem_limit):
    # Double-buffered input + output blocks get ~1/3 of the scoped VMEM limit; the rest is
    # headroom for weights, in-kernel temporaries and compiler scratch.
    budget = max(vmem_limit // 3, 1 << 20)
    per_sample = 2 * (in_bytes_per_sample + out_bytes_per_sample)
    bt = max(1, budget // max(per_sample, 1))
    bt = min(bt, n)
    if n >= 2:
        bt = min(bt, -(-n // 2))     # keep >= 2 grid steps: v7x has 2 TensorCores per chip
    return int(bt)


def basic_block_forward(x, params, stride, *, compute_dtype=jnp.bfloat16, bt=None):
    """x: (N, C_in, L) float32. Returns (N, C_out, L1) float32."""
    N, C_in, L = x.shape
    w1 = params["w1"]  # (C_out, C_in, 3)
    w2 = params["w2"]  # (C_out, C_out, 3)
    wd = params["wd"]  # (C_out, C_in, 1)
    C_out = w1.shape[0]
    L1 = (L - 1) // stride + 1               # conv1 (k=3,pad=1) == downsample (k=1,pad=0) length
    Lp = _round_up(L1, 128)                  # lane-dense slab
    in_kernel_taps = (stride == 1)

    cdt = jnp.dtype(compute_dtype)
    sub_in = 16 if cdt.itemsize == 2 else 8  # bf16 packs 16 rows/vreg
    C_in_p = _round_up(C_in, sub_in)
    C_out_p = _round_up(C_out, 8)

    # ---- input slab ----
    x_c = x.astype(cdt)
    if C_in_p != C_in:
        x_c = jnp.pad(x_c, ((0, 0), (0, C_in_p - C_in), (0, 0)))
    if in_kernel_taps:
        xin = x_c if Lp == L else jnp.pad(x_c, ((0, 0), (0, 0), (0, Lp - L)))
        C_x = C_in_p
    else:
        # stride != 1: pre-fold the three conv1 taps (only 1.5x amplification at stride 2).
        x_pad = jnp.pad(x_c, ((0, 0), (0, 0), (1, 1)))
        span = stride * (L1 - 1) + 1
        taps = [x_pad[:, :, k:k + span:stride] for k in range(3)]
        xin = jnp.concatenate(taps, axis=1)                                  # (N, 3*C_in_p, L1)
        if Lp != L1:
            xin = jnp.pad(xin, ((0, 0), (0, 0), (0, Lp - L1)))
        C_x = 3 * C_in_p

    # ---- folded / fused weights ----
    w1p = jnp.pad(w1, ((0, C_out_p - C_out), (0, C_in_p - C_in), (0, 0)))
    w1f = jnp.transpose(w1p, (0, 2, 1)).reshape(C_out_p, 3 * C_in_p)          # W[c, k*C_in_p + i]
    wdp = jnp.pad(wd[:, :, 0], ((0, C_out_p - C_out), (0, C_in_p - C_in)))
    wdf = jnp.pad(wdp, ((0, 0), (C_in_p, C_in_p)))                            # center tap only
    w1d = jnp.concatenate([w1f, wdf], axis=0).astype(cdt)                     # (2*C_out_p, 3*C_in_p)

    w2p = jnp.pad(w2, ((0, C_out_p - C_out), (0, C_out_p - C_out), (0, 0)))
    w2f = jnp.transpose(w2p, (0, 2, 1)).reshape(C_out_p, 3 * C_out_p).astype(cdt)

    gnp = jnp.stack(
        [jnp.pad(params[n], (0, C_out_p - C_out)) for n in ("g1", "b1", "g2", "b2", "g3", "b3")],
        axis=0)[..., None].astype(jnp.float32)                                # (6, C_out_p, 1)

    # ---- generation-aware block sizing ----
    vmem_limit = _vmem_budget()
    in_bytes = cdt.itemsize * C_x * Lp
    out_bytes = 4 * C_out_p * Lp
    if bt is None:
        bt = _pick_bt(N, in_bytes, out_bytes, vmem_limit)
    Np = _round_up(N, bt)
    if Np != N:
        xin = jnp.pad(xin, ((0, Np - N), (0, 0), (0, 0)))

    kernel = functools.partial(_basic_block_kernel, bt=bt, l_valid=L1, c_out=C_out_p,
                               in_kernel_taps=in_kernel_taps)

    flops = 2 * Np * L1 * (2 * C_out_p * 3 * C_in_p + C_out_p * 3 * C_out_p)
    bytes_accessed = (Np * in_bytes + Np * out_bytes
                      + cdt.itemsize * (w1d.size + w2f.size) + 4 * gnp.size)

    out = pl.pallas_call(
        kernel,
        out_shape=jax.ShapeDtypeStruct((Np, C_out_p, Lp), jnp.float32),
        grid=(Np // bt,),
        in_specs=[
            pl.BlockSpec((bt, C_x, Lp), lambda n: (n, 0, 0)),
            pl.BlockSpec((2 * C_out_p, 3 * C_in_p), lambda n: (0, 0)),
            pl.BlockSpec((C_out_p, 3 * C_out_p), lambda n: (0, 0)),
            pl.BlockSpec((6, C_out_p, 1), lambda n: (0, 0, 0)),
        ],
        out_specs=pl.BlockSpec((bt, C_out_p, Lp), lambda n: (n, 0, 0)),
        compiler_params=pltpu.CompilerParams(
            dimension_semantics=("parallel",),
            vmem_limit_bytes=int(vmem_limit)),
        cost_estimate=pl.CostEstimate(flops=int(flops),
                                      transcendentals=int(3 * Np * C_out_p),
                                      bytes_accessed=int(bytes_accessed)),
    )(xin, w1d, w2f, gnp)
    return out[:N, :C_out, :L1]


# ---------- pure-JAX reference (for correctness check) ----------
def _conv1d_ref(x, w, stride, padding):
    return jax.lax.conv_general_dilated(
        x, w, window_strides=(stride,), padding=[(padding, padding)],
        dimension_numbers=("NCH", "OIH", "NCH"))


def _gn_ref(h, g, b):
    mu = h.mean(axis=-1, keepdims=True)
    var = ((h - mu) ** 2).mean(axis=-1, keepdims=True)
    return (h - mu) / jnp.sqrt(var + EPS) * g[None, :, None] + b[None, :, None]


def _lrelu_ref(h):
    return jnp.where(h >= 0, h, SLOPE * h)


def basic_block_reference(x, p, stride):
    out = _conv1d_ref(x, p["w1"], stride, 1)
    out = _lrelu_ref(_gn_ref(out, p["g1"], p["b1"]))
    out = _conv1d_ref(out, p["w2"], 1, 1)
    out = _gn_ref(out, p["g2"], p["b2"])
    sc = _conv1d_ref(x, p["wd"], stride, 0)
    sc = _gn_ref(sc, p["g3"], p["b3"])
    return _lrelu_ref(out + sc)


if __name__ == "__main__":
    N, C_in, C_out, L = 2, 4, 8, 16
    key = jax.random.PRNGKey(0)
    ks = jax.random.split(key, 10)

    x = jax.random.normal(ks[0], (N, C_in, L), jnp.float32)
    params = {
        "w1": 0.3 * jax.random.normal(ks[1], (C_out, C_in, 3), jnp.float32),
        "w2": 0.3 * jax.random.normal(ks[2], (C_out, C_out, 3), jnp.float32),
        "wd": 0.3 * jax.random.normal(ks[3], (C_out, C_in, 1), jnp.float32),
        "g1": 1.0 + 0.1 * jax.random.normal(ks[4], (C_out,), jnp.float32),
        "b1": 0.1 * jax.random.normal(ks[5], (C_out,), jnp.float32),
        "g2": 1.0 + 0.1 * jax.random.normal(ks[6], (C_out,), jnp.float32),
        "b2": 0.1 * jax.random.normal(ks[7], (C_out,), jnp.float32),
        "g3": 1.0 + 0.1 * jax.random.normal(ks[8], (C_out,), jnp.float32),
        "b3": 0.1 * jax.random.normal(ks[9], (C_out,), jnp.float32),
    }

    # Tolerances: bf16 path quantizes inputs/weights (mem-bandwidth optimization); the f32 path
    # tolerance also leaves margin for MXU bf16-pass rounding.  Structural bugs (wrong taps,
    # masks or GN stats) produce O(1) errors and are still caught.
    for stride in (1, 2):
        ref = basic_block_reference(x, params, stride)
        for dt, tol in ((jnp.float32, 2e-2), (jnp.bfloat16, 1e-1)):
            out = jax.block_until_ready(
                basic_block_forward(x, params, stride, compute_dtype=dt))
            np.testing.assert_allclose(np.asarray(out), np.asarray(ref), rtol=tol, atol=tol)

    print("KERNEL_OK")
</pallas_src>

<mosaic_0001>
module attributes {stable_mosaic.version = 11 : i64} {
  func.func @_basic_block_kernel(%arg0: i32, %arg1: memref<1x8x128xf32, #tpu.memory_space<vmem>>, %arg2: memref<16x24xf32, #tpu.memory_space<vmem>>, %arg3: memref<8x24xf32, #tpu.memory_space<vmem>>, %arg4: memref<6x8x1xf32, #tpu.memory_space<vmem>>, %arg5: memref<1x8x128xf32, #tpu.memory_space<vmem>>) attributes {dimension_semantics = [#tpu.dimension_semantics<parallel>], iteration_bounds = array<i64: 2>, scalar_prefetch = 0 : i64, scratch_operands = 0 : i64, tpu.core_type = #tpu.core_type<tc>, window_params = [{transform_indices = @transform_0, window_bounds = array<i64: 1, 8, 128>}, {pipeline_mode = #tpu.pipeline_mode<synchronous>, transform_indices = @transform_1, window_bounds = array<i64: 16, 24>}, {pipeline_mode = #tpu.pipeline_mode<synchronous>, transform_indices = @transform_2, window_bounds = array<i64: 8, 24>}, {pipeline_mode = #tpu.pipeline_mode<synchronous>, transform_indices = @transform_3, window_bounds = array<i64: 6, 8, 1>}, {transform_indices = @transform_4, window_bounds = array<i64: 1, 8, 128>}]} {
    %0 = tpu.iota {dimensions = array<i32: 1>} : vector<1x128xi32>
    %c16_i32 = arith.constant 16 : i32
    %1 = vector.broadcast %c16_i32 : i32 to vector<1x128xi32>
    %2 = arith.cmpi slt, %0, %1 : vector<1x128xi32>
    %c1_i32 = arith.constant 1 : i32
    %3 = vector.broadcast %c1_i32 : i32 to vector<1x128xi32>
    %4 = arith.cmpi sge, %0, %3 : vector<1x128xi32>
    %c15_i32 = arith.constant 15 : i32
    %5 = vector.broadcast %c15_i32 : i32 to vector<1x128xi32>
    %6 = arith.cmpi slt, %0, %5 : vector<1x128xi32>
    %c0 = arith.constant 0 : index
    %c0_0 = arith.constant 0 : index
    %c0_1 = arith.constant 0 : index
    %7 = vector.load %arg4[%c0, %c0_0, %c0_1] : memref<6x8x1xf32, #tpu.memory_space<vmem>>, vector<1x8x1xf32>
    %8 = vector.shape_cast %7 : vector<1x8x1xf32> to vector<8x1xf32>
    %c1 = arith.constant 1 : index
    %c0_2 = arith.constant 0 : index
    %c0_3 = arith.constant 0 : index
    %9 = vector.load %arg4[%c1, %c0_2, %c0_3] : memref<6x8x1xf32, #tpu.memory_space<vmem>>, vector<1x8x1xf32>
    %10 = vector.shape_cast %9 : vector<1x8x1xf32> to vector<8x1xf32>
    %c2 = arith.constant 2 : index
    %c0_4 = arith.constant 0 : index
    %c0_5 = arith.constant 0 : index
    %11 = vector.load %arg4[%c2, %c0_4, %c0_5] : memref<6x8x1xf32, #tpu.memory_space<vmem>>, vector<1x8x1xf32>
    %12 = vector.shape_cast %11 : vector<1x8x1xf32> to vector<8x1xf32>
    %c3 = arith.constant 3 : index
    %c0_6 = arith.constant 0 : index
    %c0_7 = arith.constant 0 : index
    %13 = vector.load %arg4[%c3, %c0_6, %c0_7] : memref<6x8x1xf32, #tpu.memory_space<vmem>>, vector<1x8x1xf32>
    %14 = vector.shape_cast %13 : vector<1x8x1xf32> to vector<8x1xf32>
    %c4 = arith.constant 4 : index
    %c0_8 = arith.constant 0 : index
    %c0_9 = arith.constant 0 : index
    %15 = vector.load %arg4[%c4, %c0_8, %c0_9] : memref<6x8x1xf32, #tpu.memory_space<vmem>>, vector<1x8x1xf32>
    %16 = vector.shape_cast %15 : vector<1x8x1xf32> to vector<8x1xf32>
    %c5 = arith.constant 5 : index
    %c0_10 = arith.constant 0 : index
    %c0_11 = arith.constant 0 : index
    %17 = vector.load %arg4[%c5, %c0_10, %c0_11] : memref<6x8x1xf32, #tpu.memory_space<vmem>>, vector<1x8x1xf32>
    %18 = vector.shape_cast %17 : vector<1x8x1xf32> to vector<8x1xf32>
    %c0_12 = arith.constant 0 : index
    %c0_13 = arith.constant 0 : index
    %19 = vector.load %arg2[%c0_12, %c0_13] : memref<16x24xf32, #tpu.memory_space<vmem>>, vector<16x24xf32>
    %c0_14 = arith.constant 0 : index
    %c0_15 = arith.constant 0 : index
    %20 = vector.load %arg3[%c0_14, %c0_15] : memref<8x24xf32, #tpu.memory_space<vmem>>, vector<8x24xf32>
    %c0_i32 = arith.constant 0 : i32
    %21 = arith.index_cast %c0_i32 : i32 to index
    %c0_16 = arith.constant 0 : index
    %c0_17 = arith.constant 0 : index
    %22 = vector.load %arg1[%21, %c0_16, %c0_17] : memref<1x8x128xf32, #tpu.memory_space<vmem>>, vector<1x8x128xf32>
    %23 = vector.shape_cast %22 : vector<1x8x128xf32> to vector<8x128xf32>
    %c1_i32_18 = arith.constant 1 : i32
    %24 = tpu.dynamic_rotate %23 by %c1_i32_18 dim 1 : vector<8x128xf32>, i32 -> vector<8x128xf32>
    %cst = arith.constant 0.000000e+00 : f32
    %25 = vector.broadcast %cst : f32 to vector<8x128xf32>
    %26 = vector.shape_cast %4 : vector<1x128xi1> to vector<1x128xi1>
    %27 = vector.broadcast %26 : vector<1x128xi1> to vector<8x128xi1>
    %28 = arith.select %27, %24, %25 : vector<8x128xi1>, vector<8x128xf32>
    %c127_i32 = arith.constant 127 : i32
    %29 = tpu.dynamic_rotate %23 by %c127_i32 dim 1 : vector<8x128xf32>, i32 -> vector<8x128xf32>
    %cst_19 = arith.constant 0.000000e+00 : f32
    %30 = vector.broadcast %cst_19 : f32 to vector<8x128xf32>
    %31 = vector.shape_cast %6 : vector<1x128xi1> to vector<1x128xi1>
    %32 = vector.broadcast %31 : vector<1x128xi1> to vector<8x128xi1>
    %33 = arith.select %32, %29, %30 : vector<8x128xi1>, vector<8x128xf32>
    %34 = tpu.concatenate %28, %23, %33 in 0 : vector<8x128xf32>, vector<8x128xf32>, vector<8x128xf32> -> vector<24x128xf32>
    %cst_20 = arith.constant dense<0.000000e+00> : vector<16x128xf32>
    %35 = tpu.matmul %19, %34, %cst_20 {dimension_numbers = #tpu.dot_dimension_numbers<[1], [0], [0], [1], [0, 0, 1, 1], [], []>} : vector<16x24xf32>, vector<24x128xf32>, vector<16x128xf32> -> vector<16x128xf32>
    %cst_21 = arith.constant 0.000000e+00 : f32
    %36 = vector.shape_cast %2 : vector<1x128xi1> to vector<1x128xi1>
    %37 = vector.broadcast %36 : vector<1x128xi1> to vector<16x128xi1>
    %38 = vector.broadcast %cst_21 : f32 to vector<16x128xf32>
    %39 = arith.select %37, %35, %38 : vector<16x128xi1>, vector<16x128xf32>
    %40 = vector.extract_strided_slice %39 {offsets = [0, 0], sizes = [8, 128], strides = [1, 1]} : vector<16x128xf32> to vector<8x128xf32>
    %41 = vector.extract_strided_slice %39 {offsets = [8, 0], sizes = [8, 128], strides = [1, 1]} : vector<16x128xf32> to vector<8x128xf32>
    %cst_22 = arith.constant dense<0.000000e+00> : vector<8xf32>
    %42 = vector.multi_reduction <add>, %40, %cst_22 [1] : vector<8x128xf32> to vector<8xf32>
    %43 = vector.shape_cast %42 : vector<8xf32> to vector<8x1xf32>
    %cst_23 = arith.constant 6.250000e-02 : f32
    %44 = vector.broadcast %cst_23 : f32 to vector<8x1xf32>
    %45 = arith.mulf %43, %44 : vector<8x1xf32>
    %46 = vector.broadcast %45 : vector<8x1xf32> to vector<8x128xf32>
    %47 = arith.subf %40, %46 : vector<8x128xf32>
    %cst_24 = arith.constant 0.000000e+00 : f32
    %48 = vector.shape_cast %2 : vector<1x128xi1> to vector<1x128xi1>
    %49 = vector.broadcast %48 : vector<1x128xi1> to vector<8x128xi1>
    %50 = vector.broadcast %cst_24 : f32 to vector<8x128xf32>
    %51 = arith.select %49, %47, %50 : vector<8x128xi1>, vector<8x128xf32>
    %52 = arith.mulf %51, %51 : vector<8x128xf32>
    %cst_25 = arith.constant dense<0.000000e+00> : vector<8xf32>
    %53 = vector.multi_reduction <add>, %52, %cst_25 [1] : vector<8x128xf32> to vector<8xf32>
    %54 = vector.shape_cast %53 : vector<8xf32> to vector<8x1xf32>
    %cst_26 = arith.constant 6.250000e-02 : f32
    %55 = vector.broadcast %cst_26 : f32 to vector<8x1xf32>
    %56 = arith.mulf %54, %55 : vector<8x1xf32>
    %cst_27 = arith.constant 9.99999974E-6 : f32
    %57 = vector.broadcast %cst_27 : f32 to vector<8x1xf32>
    %58 = arith.addf %56, %57 : vector<8x1xf32>
    %59 = math.rsqrt %58 : vector<8x1xf32>
    %60 = vector.broadcast %59 : vector<8x1xf32> to vector<8x128xf32>
    %61 = arith.mulf %51, %60 : vector<8x128xf32>
    %62 = vector.broadcast %8 : vector<8x1xf32> to vector<8x128xf32>
    %63 = arith.mulf %61, %62 : vector<8x128xf32>
    %64 = vector.broadcast %10 : vector<8x1xf32> to vector<8x128xf32>
    %65 = arith.addf %63, %64 : vector<8x128xf32>
    %cst_28 = arith.constant 0.000000e+00 : f32
    %66 = vector.broadcast %cst_28 : f32 to vector<8x128xf32>
    %67 = arith.cmpf oge, %65, %66 : vector<8x128xf32>
    %cst_29 = arith.constant 0.00999999977 : f32
    %68 = vector.broadcast %cst_29 : f32 to vector<8x128xf32>
    %69 = arith.mulf %68, %65 : vector<8x128xf32>
    %70 = arith.select %67, %65, %69 : vector<8x128xi1>, vector<8x128xf32>
    %cst_30 = arith.constant 0.000000e+00 : f32
    %71 = vector.shape_cast %2 : vector<1x128xi1> to vector<1x128xi1>
    %72 = vector.broadcast %71 : vector<1x128xi1> to vector<8x128xi1>
    %73 = vector.broadcast %cst_30 : f32 to vector<8x128xf32>
    %74 = arith.select %72, %70, %73 : vector<8x128xi1>, vector<8x128xf32>
    %c1_i32_31 = arith.constant 1 : i32
    %75 = tpu.dynamic_rotate %74 by %c1_i32_31 dim 1 : vector<8x128xf32>, i32 -> vector<8x128xf32>
    %cst_32 = arith.constant 0.000000e+00 : f32
    %76 = vector.shape_cast %4 : vector<1x128xi1> to vector<1x128xi1>
    %77 = vector.broadcast %76 : vector<1x128xi1> to vector<8x128xi1>
    %78 = vector.broadcast %cst_32 : f32 to vector<8x128xf32>
    %79 = arith.select %77, %75, %78 : vector<8x128xi1>, vector<8x128xf32>
    %c127_i32_33 = arith.constant 127 : i32
    %80 = tpu.dynamic_rotate %74 by %c127_i32_33 dim 1 : vector<8x128xf32>, i32 -> vector<8x128xf32>
    %cst_34 = arith.constant 0.000000e+00 : f32
    %81 = vector.shape_cast %6 : vector<1x128xi1> to vector<1x128xi1>
    %82 = vector.broadcast %81 : vector<1x128xi1> to vector<8x128xi1>
    %83 = vector.broadcast %cst_34 : f32 to vector<8x128xf32>
    %84 = arith.select %82, %80, %83 : vector<8x128xi1>, vector<8x128xf32>
    %85 = tpu.concatenate %79, %74, %84 in 0 : vector<8x128xf32>, vector<8x128xf32>, vector<8x128xf32> -> vector<24x128xf32>
    %cst_35 = arith.constant dense<0.000000e+00> : vector<8x128xf32>
    %86 = tpu.matmul %20, %85, %cst_35 {dimension_numbers = #tpu.dot_dimension_numbers<[1], [0], [0], [1], [0, 0, 1, 1], [], []>} : vector<8x24xf32>, vector<24x128xf32>, vector<8x128xf32> -> vector<8x128xf32>
    %cst_36 = arith.constant 0.000000e+00 : f32
    %87 = vector.shape_cast %2 : vector<1x128xi1> to vector<1x128xi1>
    %88 = vector.broadcast %87 : vector<1x128xi1> to vector<8x128xi1>
    %89 = vector.broadcast %cst_36 : f32 to vector<8x128xf32>
    %90 = arith.select %88, %86, %89 : vector<8x128xi1>, vector<8x128xf32>
    %cst_37 = arith.constant dense<0.000000e+00> : vector<8xf32>
    %91 = vector.multi_reduction <add>, %90, %cst_37 [1] : vector<8x128xf32> to vector<8xf32>
    %92 = vector.shape_cast %91 : vector<8xf32> to vector<8x1xf32>
    %cst_38 = arith.constant 6.250000e-02 : f32
    %93 = vector.broadcast %cst_38 : f32 to vector<8x1xf32>
    %94 = arith.mulf %92, %93 : vector<8x1xf32>
    %95 = vector.broadcast %94 : vector<8x1xf32> to vector<8x128xf32>
    %96 = arith.subf %90, %95 : vector<8x128xf32>
    %cst_39 = arith.constant 0.000000e+00 : f32
    %97 = vector.shape_cast %2 : vector<1x128xi1> to vector<1x128xi1>
    %98 = vector.broadcast %97 : vector<1x128xi1> to vector<8x128xi1>
    %99 = vector.broadcast %cst_39 : f32 to vector<8x128xf32>
    %100 = arith.select %98, %96, %99 : vector<8x128xi1>, vector<8x128xf32>
    %101 = arith.mulf %100, %100 : vector<8x128xf32>
    %cst_40 = arith.constant dense<0.000000e+00> : vector<8xf32>
    %102 = vector.multi_reduction <add>, %101, %cst_40 [1] : vector<8x128xf32> to vector<8xf32>
    %103 = vector.shape_cast %102 : vector<8xf32> to vector<8x1xf32>
    %cst_41 = arith.constant 6.250000e-02 : f32
    %104 = vector.broadcast %cst_41 : f32 to vector<8x1xf32>
    %105 = arith.mulf %103, %104 : vector<8x1xf32>
    %cst_42 = arith.constant 9.99999974E-6 : f32
    %106 = vector.broadcast %cst_42 : f32 to vector<8x1xf32>
    %107 = arith.addf %105, %106 : vector<8x1xf32>
    %108 = math.rsqrt %107 : vector<8x1xf32>
    %109 = vector.broadcast %108 : vector<8x1xf32> to vector<8x128xf32>
    %110 = arith.mulf %100, %109 : vector<8x128xf32>
    %111 = vector.broadcast %12 : vector<8x1xf32> to vector<8x128xf32>
    %112 = arith.mulf %110, %111 : vector<8x128xf32>
    %113 = vector.broadcast %14 : vector<8x1xf32> to vector<8x128xf32>
    %114 = arith.addf %112, %113 : vector<8x128xf32>
    %cst_43 = arith.constant dense<0.000000e+00> : vector<8xf32>
    %115 = vector.multi_reduction <add>, %41, %cst_43 [1] : vector<8x128xf32> to vector<8xf32>
    %116 = vector.shape_cast %115 : vector<8xf32> to vector<8x1xf32>
    %cst_44 = arith.constant 6.250000e-02 : f32
    %117 = vector.broadcast %cst_44 : f32 to vector<8x1xf32>
    %118 = arith.mulf %116, %117 : vector<8x1xf32>
    %119 = vector.broadcast %118 : vector<8x1xf32> to vector<8x128xf32>
    %120 = arith.subf %41, %119 : vector<8x128xf32>
    %cst_45 = arith.constant 0.000000e+00 : f32
    %121 = vector.shape_cast %2 : vector<1x128xi1> to vector<1x128xi1>
    %122 = vector.broadcast %121 : vector<1x128xi1> to vector<8x128xi1>
    %123 = vector.broadcast %cst_45 : f32 to vector<8x128xf32>
    %124 = arith.select %122, %120, %123 : vector<8x128xi1>, vector<8x128xf32>
    %125 = arith.mulf %124, %124 : vector<8x128xf32>
    %cst_46 = arith.constant dense<0.000000e+00> : vector<8xf32>
    %126 = vector.multi_reduction <add>, %125, %cst_46 [1] : vector<8x128xf32> to vector<8xf32>
    %127 = vector.shape_cast %126 : vector<8xf32> to vector<8x1xf32>
    %cst_47 = arith.constant 6.250000e-02 : f32
    %128 = vector.broadcast %cst_47 : f32 to vector<8x1xf32>
    %129 = arith.mulf %127, %128 : vector<8x1xf32>
    %cst_48 = arith.constant 9.99999974E-6 : f32
    %130 = vector.broadcast %cst_48 : f32 to vector<8x1xf32>
    %131 = arith.addf %129, %130 : vector<8x1xf32>
    %132 = math.rsqrt %131 : vector<8x1xf32>
    %133 = vector.broadcast %132 : vector<8x1xf32> to vector<8x128xf32>
    %134 = arith.mulf %124, %133 : vector<8x128xf32>
    %135 = vector.broadcast %16 : vector<8x1xf32> to vector<8x128xf32>
    %136 = arith.mulf %134, %135 : vector<8x128xf32>
    %137 = vector.broadcast %18 : vector<8x1xf32> to vector<8x128xf32>
    %138 = arith.addf %136, %137 : vector<8x128xf32>
    %139 = arith.addf %114, %138 : vector<8x128xf32>
    %cst_49 = arith.constant 0.000000e+00 : f32
    %140 = vector.broadcast %cst_49 : f32 to vector<8x128xf32>
    %141 = arith.cmpf oge, %139, %140 : vector<8x128xf32>
    %cst_50 = arith.constant 0.00999999977 : f32
    %142 = vector.broadcast %cst_50 : f32 to vector<8x128xf32>
    %143 = arith.mulf %142, %139 : vector<8x128xf32>
    %144 = arith.select %141, %139, %143 : vector<8x128xi1>, vector<8x128xf32>
    %145 = arith.index_cast %c0_i32 : i32 to index
    %c0_51 = arith.constant 0 : index
    %c0_52 = arith.constant 0 : index
    %146 = vector.load %arg5[%145, %c0_51, %c0_52] : memref<1x8x128xf32, #tpu.memory_space<vmem>>, vector<1x8x128xf32>
    %147 = vector.shape_cast %146 : vector<1x8x128xf32> to vector<8x128xf32>
    %148 = vector.shape_cast %144 : vector<8x128xf32> to vector<1x8x128xf32>
    tpu.vector_store %arg5[%145, %c0_51, %c0_52], %148 {strides = array<i32>} : memref<1x8x128xf32, #tpu.memory_space<vmem>>, vector<1x8x128xf32>,
    %c1_i32_53 = arith.constant 1 : i32
    return
  }
  func.func @transform_0(%arg0: i32) -> (i32, i32, i32) {
    %c0_i32 = arith.constant 0 : i32
    %c0_i32_0 = arith.constant 0 : i32
    %c0_i32_1 = arith.constant 0 : i32
    return %arg0, %c0_i32, %c0_i32_0 : i32, i32, i32
  }
  func.func @transform_1(%arg0: i32) -> (i32, i32) {
    %c0_i32 = arith.constant 0 : i32
    %c0_i32_0 = arith.constant 0 : i32
    %c0_i32_1 = arith.constant 0 : i32
    return %c0_i32, %c0_i32_0 : i32, i32
  }
  func.func @transform_2(%arg0: i32) -> (i32, i32) {
    %c0_i32 = arith.constant 0 : i32
    %c0_i32_0 = arith.constant 0 : i32
    %c0_i32_1 = arith.constant 0 : i32
    return %c0_i32, %c0_i32_0 : i32, i32
  }
  func.func @transform_3(%arg0: i32) -> (i32, i32, i32) {
    %c0_i32 = arith.constant 0 : i32
    %c0_i32_0 = arith.constant 0 : i32
    %c0_i32_1 = arith.constant 0 : i32
    %c0_i32_2 = arith.constant 0 : i32
    return %c0_i32, %c0_i32_0, %c0_i32_1 : i32, i32, i32
  }
  func.func @transform_4(%arg0: i32) -> (i32, i32, i32) {
    %c0_i32 = arith.constant 0 : i32
    %c0_i32_0 = arith.constant 0 : i32
    %c0_i32_1 = arith.constant 0 : i32
    return %arg0, %c0_i32, %c0_i32_0 : i32, i32, i32
  }
}

</mosaic_0001>

<bundles_post_ra>
// kernel: tpu_custom_call.1
= control target key start
LH: loop header
LB: loop body
LE: loop exit
PB: predicated region body
PF: predicated region fallthrough
CT: control target
= control target key end

     0   :  { %9 = vsyncpa [#allocation3], 0  ;;  %s919_s0 = inlined_call_operand.vmem [shape: f32[2,8,128], index: 0, kind: input, shape index: {}]   ;;  %s920_s1 = inlined_call_operand.vmem [shape: f32[16,24], index: 1, kind: input, shape index: {}]   ;;  %s921_s2 = inlined_call_operand.vmem [shape: f32[8,24], index: 2, kind: input, shape index: {}]   ;;  %s922_s3 = inlined_call_operand.vmem [shape: f32[6,8,1], index: 3, kind: input, shape index: {}]   ;;  %s923_s4 = inlined_call_operand.hbm [shape: f32[2,8,128], index: 4, kind: output, shape index: {}]  }
   0x1   :  { %11 = vsyncpa [#allocation3 + $0x1], 0  ;;  %s754_s15 = smov 0   ;;  %s756_s16 = smov 0  }
   0x2   :  { %s758_s17 = smov 0   ;;  %s760_s18 = smov 0  }
   0x3 LB: > { %s775_s19 = sadd.s32 4294967295, %s719_s18   ;;  %s543_s20 = sadd.s32 4294967294, %s719_s18   ;;  %s719_s18 = sphi %s760_s18, %s929_s18   ;;  %s715_s17 = sphi %s758_s17, %s928_s17   ;;  %s711_s16 = sphi %s756_s16, %s927_s16   ;;  %s707_s15 = sphi %s754_s15, %s926_s15  }
   0x4   : > { %s779_s21 = sadd.s32 1, %s719_s18   ;;  %s113_s22 = sadd.s32 1, %s715_s17 }
   0x5   : > { %s110_s23 = ssub.s32 %s719_s18, %s779_s21  ;;  %p123_p0 = scmp.ne.s32.totalorder %s715_s17, %s711_s16 }
   0x6   : > { %p111_p1 = scmp.eq.s32.totalorder %s110_s23, 0  ;;  %p124_p2 = scmp.eq.s32.totalorder %s775_s19, 1 }
   0x7   : > { %p129_p3 = scmp.ne.s32.totalorder %s711_s16, %s707_s15  ;;  %p130_p4 = scmp.eq.s32.totalorder %s543_s20, 1 }
   0x8   : > { %s790_s24 = scalar_select %p111_p1, %s715_s17, %s113_s22  }
   0x9   : > { %p792_p5 = por %p124_p2, %p123_p0  ;;  %p796_p6 = por %p130_p4, %p129_p3 }
   0xa   : > { %p546_p7 = scmp.ge.s32.totalorder %s719_s18, 1  ;;  %p164_p8 = scmp.lt.s32.totalorder %s719_s18, 3 }
   0xc   : > { %p165_p9 = pnand %p546_p7, %p164_p8 }
   0xd   : > { %p189_p10 = scmp.lt.s32.totalorder (!%p165_p9), %s775_s19, 1  ;;  %v209_v0 = vld [vmem:[%s920_s1] sm:$0xff] (!%p165_p9)  ;;  %vm223_vm0 = vcmask (!%p165_p9), 195584   ;;  %s721_s8 = smov (!%p165_p9), 1   ;;  %v193_v2 = vlaneseq (!%p165_p9)  ;;  %vm723_vm2 = vmmov (!%p165_p9), 1   ;;  %v210_v7 = vld [vmem:[%s920_s1 + $0x8] sm:$0xff] (!%p165_p9) }
   0xe   : > { %168 = sbr.rel (%p165_p9) target bundleno = 1345 (0x541), region = 36  ;;  %581 = vmatprep.mubr.msk.f32.mxu0 (!%p165_p9), %vm223_vm0, %v209_v0  ;;  %s722_s9 = smov (!%p165_p9), 127   ;;  %v724_v11 = vmov (!%p165_p9), 0   ;;  %v198_v12 = vld [vmem:[%s922_s3] sm:$0xff] (!%p165_p9)  ;;  %v549_v18 = vld [vmem:[%s922_s3 + $0x8] sm:$0xff] (!%p165_p9)  ;;  %v550_v20 = vld [vmem:[%s922_s3 + $0x10] sm:$0xff] (!%p165_p9) }
   0xf   : > { %v813_v3 = vand.u32 (!%p165_p9), 127, %v193_v2  ;;  %650 = vset.pattern.permute.xlu1 (!%p165_p9), %v724_v11  ;;  %649 = vset.pattern.permute.xlu0 (!%p165_p9), %v724_v11  ;;  %v551_v21 = vld [vmem:[%s922_s3 + $0x18] sm:$0xff] (!%p165_p9)  ;;  %v553_v22 = vld [vmem:[%s922_s3 + $0x28] sm:$0xff] (!%p165_p9)  ;;  %v725_v26 = vmov (!%p165_p9), 0.0|0.0   ;;  %vm726_vm6 = vmmov (!%p165_p9), 0   ;;  %v727_v32 = vmov (!%p165_p9), 0.0  }
  0x10   : > { %599 = vmatprep.subr.bf16.mxu1 (!%p165_p9), %v725_v26  ;;  %590 = vmatprep.mubr.msk.f32.mxu1 (!%p165_p9), %vm726_vm6, %v727_v32  ;;  %v211_v39 = vld [vmem:[%s921_s2] sm:$0xff] (!%p165_p9)  ;;  %s563_s11 = sshll.u32 (!%p165_p9), %s775_s19, 7 }
  0x11   : > { %vm196_vm1 = vcmp.ge.s32.totalorder (!%p165_p9), %v813_v3, 1  ;;  %vm197_vm4 = vcmp.lt.s32.totalorder (!%p165_p9), %v813_v3, 15  ;;  %vm195_vm5 = vcmp.lt.s32.totalorder (!%p165_p9), %v813_v3, 16  ;;  %v552_v54 = vld [vmem:[%s922_s3 + $0x20] sm:$0xff] (!%p165_p9)  ;;  %s877_s22 = scalar_lea.hbm (!%p165_p9), %s923_s4, %s563_s11 }
  0x12   : > { %vm594_vm3 = vmpackc.low (!%p165_p9), %vm723_vm2, %vm196_vm1 }
  0x13   : > { %vm601_vm8 = vmpackc.low (!%p165_p9), %vm195_vm5, %vm196_vm1 }
  0x15   : > { %s190_s29 = scalar_select %p189_p10, %s775_s19, 1 }
  0x16   : > { %s728_s19 = smov [#allocation2]  }
  0x17   : > { %s548_s30 = sshll.u32 %s190_s29, 3  ;;  %s661_s28 = sshll.u32 %s728_s19, 4  ;;  %s662_s28 = int_to_ptr.vmem [resolvable:$false] %s661_s28 }
  0x18   : > { %s192_s7 = scalar_lea.vmem %s919_s0, %s548_s30  ;;  %s663_s29 = scalar_lea.vmem %s662_s28, 256 }
  0x19   : > { %v212_v1 = vld [vmem:[%s192_s7] sm:$0xff] }
  0x1a   : > { %213 = vrot.lane.b32.xlu0 %v212_v1, %s721_s8 }
  0x1e   : > { %218 = vrot.lane.b32.xlu0 %v212_v1, %s722_s9 }
  0x22   : > { %323 = vperm.xlu0 %649, %v198_v12  }
  0x8c   : > { %v214_v4 = vpop.permute.xlu0 %213 }
  0x8d   : > { %v593_v5 = vpack.c.bf16 %v212_v1, %v214_v4 }
  0x8f   : > { %595 = vmatprep.subr.msk.bf16.mxu0 %vm594_vm3, %v593_v5 }
  0x90   : > { %598 = vmatpush3.bf16.msk.msra.mxu0 %vm594_vm3, %v593_v5  ;;  %v219_v6 = vpop.permute.xlu0 %218 }
  0x91   : > { %579 = vmatprep.subr.msk.mxu0 %vm197_vm4, %v219_v6 }
  0x94   : > { %580 = vmatpush3.msk.msra.mxu0 %vm197_vm4, %v219_v6 }
  0x95   : > { %582 = vmatmul.mubr.msk.f32.vlgmr.msra.gmra.mrb[0].mxu0 %vm223_vm0, %v210_v7 }
  0xa1   : > { %v324_v28 = vpop.permute.xlu0 %323 }
 0x168   : > { %v583_v8 = vpop.f32.mrb[0].mxu0 }
 0x169   : > { %v296_v9 = vpop.f32.mrb[1].mxu0  ;;  %v308_v19 = vsel %vm195_vm5, %v583_v8, 0.0 }
 0x16a   : > { %v307_v10 = vsel %vm195_vm5, %v296_v9, 0.0 }
 0x16b   : > { %309 = vadd.xlane.f32.xlu1 %v307_v10 }
 0x1f8   : > { %v310_v13 = vpop.xlane.xlu1 %309 }
 0x1f9   : > { %v311_v14 = vmul.f32 0.0625, %v310_v13 }
 0x1fb   : > { %v312_v15 = vsub.f32 %v307_v10, %v311_v14 }
 0x1fd   : > { %v313_v16 = vsel %vm195_vm5, %v312_v15, 0.0 }
 0x1fe   : > { %v314_v17 = vmul.f32 %v313_v16, %v313_v16 }
 0x200   : > { %315 = vadd.xlane.f32.xlu1 %v314_v17 }
 0x211   : > { %329 = vperm.xlu1 %650, %v549_v18  }
 0x235   : > { %441 = vadd.xlane.f32.xlu1 %v308_v19 }
 0x246   : > { %431 = vperm.xlu1 %650, %v550_v20  }
 0x24a   : > { %437 = vperm.xlu1 %650, %v551_v21  }
 0x24e   : > { %461 = vperm.xlu1 %650, %v553_v22  }
 0x28d   : > { %v316_v23 = vpop.xlane.xlu1 %315 }
 0x28e   : > { %v317_v24 = vmul.f32 0.0625, %v316_v23 }
 0x290   : > { %v318_v25 = vadd.f32 1e-05, %v317_v24 }
 0x291   : > { %v330_v30 = vpop.permute.xlu1 %329 }
 0x292   : > { %651 = vrsqrt.f32 %v318_v25 }
 0x29c   : > { %v652_v27 = vpop.eup %651 }
 0x29d   : > { %v320_v29 = vmul.f32 %v652_v27, %v313_v16 }
 0x29f   : > { %v326_v31 = vmul.f32 %v324_v28, %v320_v29 }
 0x2a1   : > { %v332_v33 = vadd.f32 %v330_v30, %v326_v31 }
 0x2a3   : > { %v334_v34 = vmul.f32 0.01, %v332_v33  ;;  %vm333_vm7 = vcmp.ge.f32.partialorder %v332_v33, 0.0 }
 0x2a5   : > { %v335_v35 = vsel %vm333_vm7, %v332_v33, %v334_v34 }
 0x2a6   : > { %v336_v36 = vsel %vm195_vm5, %v335_v35, 0.0 }
 0x2a7   : > { %337 = vrot.lane.b32.xlu0 %v336_v36, %s721_s8 }
 0x2ab   : > { %340 = vrot.lane.b32.xlu0 %v336_v36, %s722_s9  ;;  %s186_s9 = sand.u32 1, %s711_s16  }
 0x2ac   : > { %s547_s10 = sshll.u32 %s186_s9, 3  ;;  %s471_s23 = scalar_lea.sflag [#allocation3], %s186_s9 }
 0x2ad   : > { %s188_s12 = scalar_lea.vmem [#allocation2], %s547_s10 }
 0x2ae   : > { %s484_s13 = sshll.u32 %s188_s12, 4  ;;  %s879_s13 = int_to_ptr.vmem [resolvable:$true] %s484_s13 }
 0x2af   : > { %s657_s27 = scalar_lea.vmem %s879_s13, 128  ;;  %p664_p0 = scmp.lt.s32.totalorder %s879_s13, %s662_s28 }
 0x2b0   : > { %p658_p11 = scmp.ne.s32.totalorder %s879_s13, %s657_s27  ;;  %p665_p1 = scmp.lt.s32.totalorder %s663_s29, %s657_s27 }
 0x2b2   : > { %p659_p12 = pnand %p658_p11, %p792_p5  ;;  %p666_p2 = por %p665_p1, %p664_p0 }
 0x2b4   : > { %p660_p13 = pneg %p659_p12 }
 0x2b6   : > { %p667_p3 = pnand %p666_p2, %p660_p13 }
 0x2c2   : > { %v442_v41 = vpop.xlane.xlu1 %441 }
 0x2c3   : > { %v443_v42 = vmul.f32 0.0625, %v442_v41 }
 0x2c5   : > { %v444_v43 = vsub.f32 %v308_v19, %v443_v42 }
 0x2c6   : > { %v432_v61 = vpop.permute.xlu1 %431 }
 0x2c7   : > { %v445_v47 = vsel %vm195_vm5, %v444_v43, 0.0 }
 0x2c8   : > { %v446_v48 = vmul.f32 %v445_v47, %v445_v47 }
 0x2ca   : > { %v438_v63 = vpop.permute.xlu1 %437 }
 0x2ce   : > { %v462_v6 = vpop.permute.xlu1 %461 }
 0x319   : > { %v338_v37 = vpop.permute.xlu0 %337 }
 0x31a   : > { %v600_v38 = vpack.c.bf16 %v335_v35, %v338_v37 }
 0x31c   : > { %602 = vmatpush3.bf16.msk.msra.mxu1 %vm601_vm8, %v600_v38 }
 0x31d   : > { %588 = vmatprep.subr.mxu1 %v727_v32  ;;  %v341_v40 = vpop.permute.xlu0 %340 }
 0x320   : > { %589 = vmatpush3.msk.msra.mxu1 %vm197_vm4, %v341_v40 }
 0x321   : > { %591 = vmatmul.mubr.msk.f32.vlgmr.msra.gmra.mrb[0].mxu1 %vm223_vm0, %v211_v39 }
 0x3f4   : > { %v412_v44 = vpop.f32.mrb[0].mxu1 }
 0x3f5   : > { %v592_v45 = vpop.f32.mrb[1].mxu1  ;;  %v416_v46 = vsel %vm195_vm5, %v412_v44, 0.0 }
 0x3f6   : > { %417 = vadd.xlane.f32.xlu0 %v416_v46 }
 0x3fa   : > { %447 = vadd.xlane.f32.xlu0 %v446_v48 }
 0x483   : > { %v418_v49 = vpop.xlane.xlu0 %417 }
 0x484   : > { %v419_v50 = vmul.f32 0.0625, %v418_v49 }
 0x486   : > { %v420_v51 = vsub.f32 %v416_v46, %v419_v50 }
 0x487   : > { %v448_v55 = vpop.xlane.xlu0 %447 }
 0x488   : > { %v421_v52 = vsel %vm195_vm5, %v420_v51, 0.0  ;;  %v449_v56 = vmul.f32 0.0625, %v448_v55 }
 0x489   : > { %v422_v53 = vmul.f32 %v421_v52, %v421_v52 }
 0x48a   : > { %v450_v57 = vadd.f32 1e-05, %v449_v56 }
 0x48b   : > { %423 = vadd.xlane.f32.xlu0 %v422_v53 }
 0x48c   : > { %653 = vrsqrt.f32 %v450_v57 }
 0x496   : > { %v654_v62 = vpop.eup %653 }
 0x497   : > { %v452_v1 = vmul.f32 %v654_v62, %v445_v47 }
 0x4a1   : > { %455 = vperm.xlu0 %649, %v552_v54  }
 0x518   : > { %v424_v58 = vpop.xlane.xlu0 %423 }
 0x519   : > { %v425_v59 = vmul.f32 0.0625, %v424_v58 }
 0x51b   : > { %v426_v60 = vadd.f32 1e-05, %v425_v59 }
 0x51d   : > { %655 = vrsqrt.f32 %v426_v60 }
 0x520   : > { %v456_v0 = vpop.permute.xlu0 %455 }
 0x521   : > { %v458_v4 = vmul.f32 %v456_v0, %v452_v1 }
 0x523   : > { %v464_v8 = vadd.f32 %v462_v6, %v458_v4 }
 0x527   : > { %v656_v2 = vpop.eup %655 }
 0x528   : > { %v428_v3 = vmul.f32 %v656_v2, %v421_v52 }
 0x52a   : > { %v434_v5 = vmul.f32 %v432_v61, %v428_v3 }
 0x52c   : > { %v440_v7 = vadd.f32 %v438_v63, %v434_v5 }
 0x52e   : > { %v465_v9 = vadd.f32 %v464_v8, %v440_v7 }
 0x530   : > { %vm466_vm9 = vcmp.ge.f32.partialorder %v465_v9, 0.0  ;;  %v467_v10 = vmul.f32 0.01, %v465_v9 }
 0x532   : > { %v468_v11 = vsel %vm466_vm9, %v465_v9, %v467_v10 }
 0x533   : > { %469 = vst [vmem:[%s188_s12] sm:$0xff] %v468_v11 }
 0x534   : > { %670 = shalt.err (!%p667_p3)
}
 0x535   : > { %s671_s30 = scalar_lea.hbm %s877_s22, 128  ;;  %s675_s7 = scalar_lea.hbm %s923_s4, 256 }
 0x536   : > { %p672_p4 = scmp.ne.s32.totalorder %s877_s22, %s671_s30  ;;  %p676_p9 = scmp.lt.u32.totalorder %s877_s22, %s923_s4 }
 0x537   : > { %p677_p10 = scmp.lt.u32.totalorder %s675_s7, %s671_s30  ;;  %p679_p12 = scmp.lt.u32.totalorder %s671_s30, %s877_s22 }
 0x538   : > { %p673_p7 = pnand %p672_p4, %p792_p5 }
 0x539   : > { %p678_p11 = por %p677_p10, %p676_p9 }
 0x53a   : > { %p674_p8 = pneg %p673_p7 }
 0x53b   : > { %p680_p13 = por %p679_p12, %p678_p11 }
 0x53d   : > { %p681_p0 = pnand %p680_p13, %p674_p8 }
 0x53f   : > { %684 = shalt.err (!%p681_p0)
}
 0x540   : > { %603 = dma.vmem_to_hbm [thread:$0]  (%p792_p5), %s879_s13, 128, %s877_s22, %s471_s23  }
 0x541 PF: > { %p609_p1 = scmp.ge.s32.totalorder %s719_s18, 2  ;;  %s496_s10 = sand.u32 1, %s707_s15  }
 0x542   : > { %s497_s11 = scalar_lea.sflag [#allocation3], %s496_s10 }
 0x543   : > { %p606_p2 = pnand %p609_p1, %p796_p6 }
 0x545   : > { %702 = dma.done.wait (!%p606_p2), %s497_s11, 128  }
 0x546   : > { %704 = vsyncadd (!%p606_p2), %s497_s11, 4294967168  ;;  %p14_p3 = scmp.ge.s32.totalorder %s779_s21, 4   ;;  %s926_s15 = smov %s711_s16 }
 0x547   : > { %s927_s16 = smov %s715_s17  ;;  %s928_s17 = smov %s790_s24 }
 0x548   : > { %s929_s18 = smov %s779_s21  ;;  %16 = sbr.rel (!%p14_p3) target bundleno = 3 (0x3), region = 76 }
 0x54f   :  { %502 = vsyncpa [#allocation3], 1 }
 0x550   :  { %504 = vsyncpa [#allocation3 + $0x1], 1 }

</bundles_post_ra>
